<compile_context>
chip_gen: v7x
topology: tpu7x:2x2x1
jax: 0.10.0
libtpu: 0.0.40
codegen_flags: <defaults>
</compile_context>

<pallas_src>
import functools

import jax
import jax.numpy as jnp
from jax.experimental import pallas as pl
from jax.experimental.pallas import tpu as pltpu

LANE = 128      # TPU lane width: keep last dims multiples of this
SUBLANE = 8     # f32 sublane tile


def _round_up(v: int, m: int) -> int:
    return ((v + m - 1) // m) * m


def _fcnet_fused_kernel(*refs, num_layers: int, silu_flags):
    """One batch tile through the whole MLP.

    refs layout:  x_ref, W_0..W_{L-1}, b_0..b_{L-1}, o_ref
      x_ref : (tm, K0p)          compute dtype (f32 or bf16)
      W_l   : (K_l_p, N_l_p)     compute dtype, VMEM-resident across tiles
      b_l   : (1,  N_l_p)        f32
      o_ref : (tm, N_last_p)     output dtype
    """
    x_ref = refs[0]
    w_refs = refs[1:1 + num_layers]
    b_refs = refs[1 + num_layers:1 + 2 * num_layers]
    o_ref = refs[1 + 2 * num_layers]

    h = x_ref[...]
    for li in range(num_layers):
        # MXU matmul with f32 accumulation.
        y = jnp.dot(h, w_refs[li][...], preferred_element_type=jnp.float32)
        y = y + b_refs[li][...]                        # f32 bias add
        if silu_flags[li]:
            # SiLU in f32: exp runs on the EUP; exact divide keeps numerics
            # tight vs the reference.  (pl.reciprocal(..., approx=True) is a
            # further EUP-only option once compute-bound at large batch.)
            y = y * (1.0 / (1.0 + jnp.exp(-y)))
        if li + 1 < num_layers:
            h = y.astype(w_refs[li + 1].dtype)         # feed next matmul
        else:
            o_ref[...] = y.astype(o_ref.dtype)         # lane-dense store


def fcnet_forward(params, x, *, compute_dtype=jnp.float32, target_tm=128):
    """Model_FCNet.forward as a single fused Pallas TPU kernel.

    params = [(W_in, b_in), (W_h1, b_h1), ..., (W_out, b_out)] with
    W_l stored (in_features, out_features) and b_l stored (1, out_features).
    """
    num_layers = len(params)
    M, K = x.shape
    dims = [K] + [w.shape[1] for (w, _) in params]
    dims_p = [_round_up(d, LANE) for d in dims]

    # Batch tile: multiple of 8 sublanes, capped at target_tm so larger
    # batches get >= 2 "parallel" grid steps (shards across v7x's two TCs).
    tm = min(target_tm, _round_up(M, SUBLANE))
    m_pad = _round_up(M, tm)

    # Host-side zero padding (one-time prep; amortized under jit in real use).
    xp = jnp.pad(x.astype(compute_dtype),
                 ((0, m_pad - M), (0, dims_p[0] - K)))
    ws, bs = [], []
    for li, (w, b) in enumerate(params):
        ws.append(jnp.pad(w.astype(compute_dtype),
                          ((0, dims_p[li] - dims[li]),
                           (0, dims_p[li + 1] - dims[li + 1]))))
        bs.append(jnp.pad(b.astype(jnp.float32),
                          ((0, 0), (0, dims_p[li + 1] - dims[li + 1]))))

    # SiLU after hidden layers only (not after the input or the output layer).
    silu_flags = tuple(0 < li < num_layers - 1 for li in range(num_layers))

    kernel = functools.partial(_fcnet_fused_kernel,
                               num_layers=num_layers, silu_flags=silu_flags)

    out_dtype = x.dtype
    in_specs = (
        [pl.BlockSpec((tm, dims_p[0]), lambda i: (i, 0))]                  # x tile
        + [pl.BlockSpec((dims_p[li], dims_p[li + 1]), lambda i: (0, 0))    # weights
           for li in range(num_layers)]
        + [pl.BlockSpec((1, dims_p[li + 1]), lambda i: (0, 0))             # biases
           for li in range(num_layers)]
    )
    out_specs = pl.BlockSpec((tm, dims_p[-1]), lambda i: (i, 0))

    # Advisory cost estimate so XLA schedules the fused call sensibly.
    flops = sum(2 * m_pad * dims_p[li] * dims_p[li + 1]
                for li in range(num_layers))
    transcendentals = sum(m_pad * dims_p[li + 1]
                          for li in range(num_layers) if silu_flags[li])
    c_item = jnp.dtype(compute_dtype).itemsize
    o_item = jnp.dtype(out_dtype).itemsize
    bytes_accessed = (xp.size * c_item
                      + sum(w.size for w in ws) * c_item
                      + sum(b.size for b in bs) * 4
                      + m_pad * dims_p[-1] * o_item)

    # VMEM budget: double-buffered x/out tiles + resident weights/biases
    # + intermediate headroom, clamped to v7x's 64 MiB physical ceiling.
    est = (2 * tm * dims_p[0] * c_item
           + 2 * tm * dims_p[-1] * o_item
           + sum(w.size for w in ws) * c_item
           + sum(b.size for b in bs) * 4
           + 2 * tm * max(dims_p) * 4)
    vmem_limit = int(min(max(2 * est, 32 << 20), 64 << 20))

    out_pad = pl.pallas_call(
        kernel,
        out_shape=jax.ShapeDtypeStruct((m_pad, dims_p[-1]), out_dtype),
        grid=(m_pad // tm,),
        in_specs=in_specs,
        out_specs=out_specs,
        compiler_params=pltpu.CompilerParams(
            dimension_semantics=("parallel",),
            vmem_limit_bytes=vmem_limit),
        cost_estimate=pl.CostEstimate(flops=flops,
                                      transcendentals=transcendentals,
                                      bytes_accessed=bytes_accessed),
    )(xp, *ws, *bs)

    return out_pad[:M, :dims[-1]]


def init_fcnet_params(key, input_size, layers, output_size, dtype=jnp.float32):
    """Deterministic synthetic parameters (PyTorch-Linear-like uniform init)."""
    dims = [input_size] + list(layers) + [output_size]
    params = []
    for i in range(len(dims) - 1):
        fan_in, fan_out = dims[i], dims[i + 1]
        key, kw, kb = jax.random.split(key, 3)
        bound = 1.0 / (fan_in ** 0.5)
        w = jax.random.uniform(kw, (fan_in, fan_out), dtype, -bound, bound)
        b = jax.random.uniform(kb, (1, fan_out), dtype, -bound, bound)
        params.append((w, b))
    return params


def fcnet_forward_ref(params, x):
    """Pure-JAX reference matching Model_FCNet.forward."""
    n = len(params)
    h = x @ params[0][0] + params[0][1]
    for w, b in params[1:n - 1]:
        h = h @ w + b
        h = h * jax.nn.sigmoid(h)
    return h @ params[n - 1][0] + params[n - 1][1]


if __name__ == "__main__":
    # Small shapes consistent with the module: FCNet(32, [64, 64], 16)
    batch = 8
    input_size = 32
    layers = [64, 64]
    output_size = 16

    key = jax.random.PRNGKey(0)
    key, kx = jax.random.split(key)
    x = jax.random.normal(kx, (batch, input_size), jnp.float32)
    params = init_fcnet_params(key, input_size, layers, output_size)

    ref = fcnet_forward_ref(params, x)

    # Fused kernel, f32 compute (tight numeric check).
    out_f32 = jax.block_until_ready(fcnet_forward(params, x))
    assert out_f32.shape == (batch, output_size)
    assert jnp.allclose(out_f32, ref, atol=1e-4, rtol=1e-4), "f32 mismatch vs reference"

    # Fused kernel, bf16 matmul path (v6e/v7x MXU rate, f32 accumulation);
    # checked against the f32 reference with a bf16-appropriate tolerance.
    out_bf16 = jax.block_until_ready(
        fcnet_forward(params, x, compute_dtype=jnp.bfloat16))
    assert out_bf16.shape == (batch, output_size)
    assert jnp.allclose(out_bf16, ref, atol=5e-2, rtol=5e-2), "bf16 mismatch vs reference"

    print("KERNEL_OK")
</pallas_src>

<mosaic_0001>
module attributes {stable_mosaic.version = 11 : i64} {
  func.func @_fcnet_fused_kernel(%arg0: i32, %arg1: memref<8x128xf32, #tpu.memory_space<vmem>>, %arg2: memref<128x128xf32, #tpu.memory_space<vmem>>, %arg3: memref<128x128xf32, #tpu.memory_space<vmem>>, %arg4: memref<128x128xf32, #tpu.memory_space<vmem>>, %arg5: memref<1x128xf32, #tpu.memory_space<vmem>>, %arg6: memref<1x128xf32, #tpu.memory_space<vmem>>, %arg7: memref<1x128xf32, #tpu.memory_space<vmem>>, %arg8: memref<8x128xf32, #tpu.memory_space<vmem>>) attributes {dimension_semantics = [#tpu.dimension_semantics<parallel>], iteration_bounds = array<i64: 1>, scalar_prefetch = 0 : i64, scratch_operands = 0 : i64, tpu.core_type = #tpu.core_type<tc>, window_params = [{transform_indices = @transform_0, window_bounds = array<i64: 8, 128>}, {pipeline_mode = #tpu.pipeline_mode<synchronous>, transform_indices = @transform_1, window_bounds = array<i64: 128, 128>}, {pipeline_mode = #tpu.pipeline_mode<synchronous>, transform_indices = @transform_2, window_bounds = array<i64: 128, 128>}, {pipeline_mode = #tpu.pipeline_mode<synchronous>, transform_indices = @transform_3, window_bounds = array<i64: 128, 128>}, {pipeline_mode = #tpu.pipeline_mode<synchronous>, transform_indices = @transform_4, window_bounds = array<i64: 1, 128>}, {pipeline_mode = #tpu.pipeline_mode<synchronous>, transform_indices = @transform_5, window_bounds = array<i64: 1, 128>}, {pipeline_mode = #tpu.pipeline_mode<synchronous>, transform_indices = @transform_6, window_bounds = array<i64: 1, 128>}, {transform_indices = @transform_7, window_bounds = array<i64: 8, 128>}]} {
    %c0 = arith.constant 0 : index
    %c0_0 = arith.constant 0 : index
    %0 = vector.load %arg1[%c0, %c0_0] : memref<8x128xf32, #tpu.memory_space<vmem>>, vector<8x128xf32>
    %c0_1 = arith.constant 0 : index
    %c0_2 = arith.constant 0 : index
    %1 = vector.load %arg2[%c0_1, %c0_2] : memref<128x128xf32, #tpu.memory_space<vmem>>, vector<128x128xf32>
    %cst = arith.constant dense<0.000000e+00> : vector<8x128xf32>
    %2 = tpu.matmul %0, %1, %cst {dimension_numbers = #tpu.dot_dimension_numbers<[1], [0], [0], [1], [0, 0, 1, 1], [], []>} : vector<8x128xf32>, vector<128x128xf32>, vector<8x128xf32> -> vector<8x128xf32>
    %c0_3 = arith.constant 0 : index
    %c0_4 = arith.constant 0 : index
    %3 = vector.load %arg5[%c0_3, %c0_4] : memref<1x128xf32, #tpu.memory_space<vmem>>, vector<1x128xf32>
    %4 = vector.broadcast %3 : vector<1x128xf32> to vector<8x128xf32>
    %5 = arith.addf %2, %4 : vector<8x128xf32>
    %c0_5 = arith.constant 0 : index
    %c0_6 = arith.constant 0 : index
    %6 = vector.load %arg3[%c0_5, %c0_6] : memref<128x128xf32, #tpu.memory_space<vmem>>, vector<128x128xf32>
    %cst_7 = arith.constant dense<0.000000e+00> : vector<8x128xf32>
    %7 = tpu.matmul %5, %6, %cst_7 {dimension_numbers = #tpu.dot_dimension_numbers<[1], [0], [0], [1], [0, 0, 1, 1], [], []>} : vector<8x128xf32>, vector<128x128xf32>, vector<8x128xf32> -> vector<8x128xf32>
    %c0_8 = arith.constant 0 : index
    %c0_9 = arith.constant 0 : index
    %8 = vector.load %arg6[%c0_8, %c0_9] : memref<1x128xf32, #tpu.memory_space<vmem>>, vector<1x128xf32>
    %9 = vector.broadcast %8 : vector<1x128xf32> to vector<8x128xf32>
    %10 = arith.addf %7, %9 : vector<8x128xf32>
    %cst_10 = arith.constant 0.000000e+00 : f32
    %11 = vector.broadcast %cst_10 : f32 to vector<8x128xf32>
    %12 = arith.subf %11, %10 : vector<8x128xf32>
    %13 = math.exp %12 : vector<8x128xf32>
    %cst_11 = arith.constant 1.000000e+00 : f32
    %14 = vector.broadcast %cst_11 : f32 to vector<8x128xf32>
    %15 = arith.addf %14, %13 : vector<8x128xf32>
    %cst_12 = arith.constant 1.000000e+00 : f32
    %16 = vector.broadcast %cst_12 : f32 to vector<8x128xf32>
    %17 = arith.divf %16, %15 : vector<8x128xf32>
    %18 = arith.mulf %10, %17 : vector<8x128xf32>
    %c0_13 = arith.constant 0 : index
    %c0_14 = arith.constant 0 : index
    %19 = vector.load %arg4[%c0_13, %c0_14] : memref<128x128xf32, #tpu.memory_space<vmem>>, vector<128x128xf32>
    %cst_15 = arith.constant dense<0.000000e+00> : vector<8x128xf32>
    %20 = tpu.matmul %18, %19, %cst_15 {dimension_numbers = #tpu.dot_dimension_numbers<[1], [0], [0], [1], [0, 0, 1, 1], [], []>} : vector<8x128xf32>, vector<128x128xf32>, vector<8x128xf32> -> vector<8x128xf32>
    %c0_16 = arith.constant 0 : index
    %c0_17 = arith.constant 0 : index
    %21 = vector.load %arg7[%c0_16, %c0_17] : memref<1x128xf32, #tpu.memory_space<vmem>>, vector<1x128xf32>
    %22 = vector.broadcast %21 : vector<1x128xf32> to vector<8x128xf32>
    %23 = arith.addf %20, %22 : vector<8x128xf32>
    %c0_18 = arith.constant 0 : index
    %c0_19 = arith.constant 0 : index
    %24 = vector.load %arg8[%c0_18, %c0_19] : memref<8x128xf32, #tpu.memory_space<vmem>>, vector<8x128xf32>
    tpu.vector_store %arg8[%c0_18, %c0_19], %23 {strides = array<i32>} : memref<8x128xf32, #tpu.memory_space<vmem>>, vector<8x128xf32>,
    return
  }
  func.func @transform_0(%arg0: i32) -> (i32, i32) {
    %c0_i32 = arith.constant 0 : i32
    %c0_i32_0 = arith.constant 0 : i32
    return %arg0, %c0_i32 : i32, i32
  }
  func.func @transform_1(%arg0: i32) -> (i32, i32) {
    %c0_i32 = arith.constant 0 : i32
    %c0_i32_0 = arith.constant 0 : i32
    %c0_i32_1 = arith.constant 0 : i32
    return %c0_i32, %c0_i32_0 : i32, i32
  }
  func.func @transform_2(%arg0: i32) -> (i32, i32) {
    %c0_i32 = arith.constant 0 : i32
    %c0_i32_0 = arith.constant 0 : i32
    %c0_i32_1 = arith.constant 0 : i32
    return %c0_i32, %c0_i32_0 : i32, i32
  }
  func.func @transform_3(%arg0: i32) -> (i32, i32) {
    %c0_i32 = arith.constant 0 : i32
    %c0_i32_0 = arith.constant 0 : i32
    %c0_i32_1 = arith.constant 0 : i32
    return %c0_i32, %c0_i32_0 : i32, i32
  }
  func.func @transform_4(%arg0: i32) -> (i32, i32) {
    %c0_i32 = arith.constant 0 : i32
    %c0_i32_0 = arith.constant 0 : i32
    %c0_i32_1 = arith.constant 0 : i32
    return %c0_i32, %c0_i32_0 : i32, i32
  }
  func.func @transform_5(%arg0: i32) -> (i32, i32) {
    %c0_i32 = arith.constant 0 : i32
    %c0_i32_0 = arith.constant 0 : i32
    %c0_i32_1 = arith.constant 0 : i32
    return %c0_i32, %c0_i32_0 : i32, i32
  }
  func.func @transform_6(%arg0: i32) -> (i32, i32) {
    %c0_i32 = arith.constant 0 : i32
    %c0_i32_0 = arith.constant 0 : i32
    %c0_i32_1 = arith.constant 0 : i32
    return %c0_i32, %c0_i32_0 : i32, i32
  }
  func.func @transform_7(%arg0: i32) -> (i32, i32) {
    %c0_i32 = arith.constant 0 : i32
    %c0_i32_0 = arith.constant 0 : i32
    return %arg0, %c0_i32 : i32, i32
  }
}

</mosaic_0001>

<bundles_post_ra>
// kernel: tpu_custom_call.1
= control target key start
LH: loop header
LB: loop body
LE: loop exit
PB: predicated region body
PF: predicated region fallthrough
CT: control target
= control target key end

     0   :  { %12 = vsyncpa [#allocation3], 0  ;;  %s906_s0 = inlined_call_operand.hbm [shape: f32[8,128], index: 0, kind: input, shape index: {}]   ;;  %s907_s1 = inlined_call_operand.hbm [shape: f32[128,128], index: 1, kind: input, shape index: {}]   ;;  %s908_s2 = inlined_call_operand.hbm [shape: f32[128,128], index: 2, kind: input, shape index: {}]   ;;  %s909_s3 = inlined_call_operand.hbm [shape: f32[128,128], index: 3, kind: input, shape index: {}]   ;;  %s910_s4 = inlined_call_operand.vmem [shape: f32[1,128], index: 4, kind: input, shape index: {}]   ;;  %s911_s5 = inlined_call_operand.vmem [shape: f32[1,128], index: 5, kind: input, shape index: {}]   ;;  %s912_s6 = inlined_call_operand.vmem [shape: f32[1,128], index: 6, kind: input, shape index: {}]   ;;  %s913_s7 = inlined_call_operand.hbm [shape: f32[8,128], index: 7, kind: output, shape index: {}]  }
   0x1   :  { %13 = vsyncpa [#allocation6], 0 }
   0x2   :  { %14 = vsyncpa [#allocation9], 0 }
   0x3   :  { %15 = vsyncpa [#allocation4], 0  ;;  %s748_s24 = smov [#allocation5]   ;;  %s630_s28 = scalar_lea.hbm %s907_s1, 2048 }
   0x4   :  { %s31_s25 = sshll.u32 %s748_s24, 4  ;;  %p631_p0 = scmp.ne.s32.totalorder %s907_s1, %s630_s28  ;;  %s32_s25 = int_to_ptr.vmem [resolvable:$true] %s31_s25 }
   0x5   :  { %p634_p1 = scmp.lt.u32.totalorder %s630_s28, %s907_s1 }
   0x7   :  { %p636_p2 = pnand %p634_p1, %p631_p0 }
   0x9   :  { %639 = shalt.err (!%p636_p2)
}
   0xa   :  { %s640_s10 = scalar_lea.vmem %s32_s25, 2048  ;;  %p645_p4 = scmp.lt.s32.totalorder %s32_s25, %s32_s25 }
   0xb   :  { %p641_p3 = scmp.ne.s32.totalorder %s32_s25, %s640_s10  ;;  %p646_p5 = scmp.lt.s32.totalorder %s640_s10, %s640_s10 }
   0xd   :  { %p647_p6 = por %p646_p5, %p645_p4 }
   0xf   :  { %p648_p7 = pnand %p647_p6, %p641_p3 }
  0x11   :  { %651 = shalt.err (!%p648_p7)
}
  0x12   :  { %s749_s11 = smov 128   ;;  %s750_s12 = smov 8  }
  0x13   :  { %37 = dma.hbm_to_vmem [thread:$0]  %s907_s1, 2048, %s32_s25, [#allocation6], %s749_s11, %s749_s11, %s750_s12  }
  0x14   :  { %s751_s15 = smov [#allocation2]   ;;  %s752_s17 = smov [#allocation7]  }
  0x15   :  { %s22_s16 = sshll.u32 %s751_s15, 4  ;;  %s43_s18 = sshll.u32 %s752_s17, 4  ;;  %s23_s16 = int_to_ptr.vmem [resolvable:$true] %s22_s16  ;;  %s44_s18 = int_to_ptr.vmem [resolvable:$true] %s43_s18 }
  0x16   :  { %s652_s21 = scalar_lea.hbm %s906_s0, 128 }
  0x17   :  { %p653_p8 = scmp.ne.s32.totalorder %s906_s0, %s652_s21  ;;  %p656_p9 = scmp.lt.u32.totalorder %s652_s21, %s906_s0 }
  0x19   :  { %p658_p10 = pnand %p656_p9, %p653_p8 }
  0x1b   :  { %661 = shalt.err (!%p658_p10)
}
  0x1c   :  { %s662_s1 = scalar_lea.vmem %s23_s16, 128  ;;  %p667_p12 = scmp.lt.s32.totalorder %s23_s16, %s23_s16 }
  0x1d   :  { %p663_p11 = scmp.ne.s32.totalorder %s23_s16, %s662_s1  ;;  %p668_p13 = scmp.lt.s32.totalorder %s662_s1, %s662_s1 }
  0x1f   :  { %p669_p0 = por %p668_p13, %p667_p12 }
  0x21   :  { %p670_p1 = pnand %p669_p0, %p663_p11 }
  0x23   :  { %673 = shalt.err (!%p670_p1)
}
  0x24   :  { %25 = dma.hbm_to_vmem [thread:$0]  %s906_s0, 128, %s23_s16, [#allocation3]  }
  0x25   :  { %s674_s30 = scalar_lea.hbm %s908_s2, 2048 }
  0x26   :  { %p675_p2 = scmp.ne.s32.totalorder %s908_s2, %s674_s30  ;;  %p678_p3 = scmp.lt.u32.totalorder %s674_s30, %s908_s2 }
  0x28   :  { %p680_p4 = pnand %p678_p3, %p675_p2 }
  0x2a   :  { %683 = shalt.err (!%p680_p4)
}
  0x2b   :  { %s684_s14 = scalar_lea.vmem %s44_s18, 2048  ;;  %p689_p6 = scmp.lt.s32.totalorder %s44_s18, %s44_s18 }
  0x2c   :  { %p685_p5 = scmp.ne.s32.totalorder %s44_s18, %s684_s14  ;;  %p690_p7 = scmp.lt.s32.totalorder %s684_s14, %s684_s14 }
  0x2e   :  { %p691_p8 = por %p690_p7, %p689_p6 }
  0x30   :  { %p692_p9 = pnand %p691_p8, %p685_p5 }
  0x32   :  { %695 = shalt.err (!%p692_p9)
}
  0x33   :  { %49 = dma.hbm_to_vmem [thread:$0]  %s908_s2, 2048, %s44_s18, [#allocation6], %s749_s11, %s749_s11, %s750_s12  }
  0x34   :  { %s753_s16 = smov [#allocation8]   ;;  %s696_s21 = scalar_lea.hbm %s909_s3, 2048 }
  0x35   :  { %s55_s17 = sshll.u32 %s753_s16, 4  ;;  %p697_p10 = scmp.ne.s32.totalorder %s909_s3, %s696_s21  ;;  %s56_s17 = int_to_ptr.vmem [resolvable:$true] %s55_s17 }
  0x36   :  { %p700_p11 = scmp.lt.u32.totalorder %s696_s21, %s909_s3 }
  0x38   :  { %p702_p12 = pnand %p700_p11, %p697_p10 }
  0x3a   :  { %705 = shalt.err (!%p702_p12)
}
  0x3b   :  { %s706_s1 = scalar_lea.vmem %s56_s17, 2048  ;;  %p711_p0 = scmp.lt.s32.totalorder %s56_s17, %s56_s17 }
  0x3c   :  { %p707_p13 = scmp.ne.s32.totalorder %s56_s17, %s706_s1  ;;  %p712_p1 = scmp.lt.s32.totalorder %s706_s1, %s706_s1 }
  0x3e   :  { %p713_p2 = por %p712_p1, %p711_p0 }
  0x40   :  { %p714_p3 = pnand %p713_p2, %p707_p13 }
  0x42   :  { %717 = shalt.err (!%p714_p3)
}
  0x43   :  { %61 = dma.hbm_to_vmem [thread:$0]  %s909_s3, 2048, %s56_s17, [#allocation9], %s749_s11, %s749_s11, %s750_s12  }
  0x44   :  { %740 = dma.done.wait [#allocation3], 128  }
  0x45   :  { %741 = vsyncadd [#allocation3], 4294967168 }
  0x46   :  { %742 = dma.done.wait [#allocation6], 4096  }
  0x47   :  { %743 = vsyncadd [#allocation6], 4294963200 }
  0x48   :  { %744 = dma.done.wait [#allocation9], 2048  }
  0x49   :  { %745 = vsyncadd [#allocation9], 4294965248  ;;  %v754_v0 = vmov 0.0|0.0   ;;  %vm755_vm0 = vmmov 0   ;;  %v756_v1 = vmov 0.0   ;;  %v81_v2 = vld [vmem:[#allocation5] sm:$0xff] }
  0x4a   :  { %544 = vmatprep.subr.bf16.mxu0 %v754_v0  ;;  %471 = vmatprep.mubr.msk.f32.mxu0 %vm755_vm0, %v756_v1  ;;  %v82_v3 = vld [vmem:[#allocation5 + $0x8] sm:$0xff]  ;;  %v83_v4 = vld [vmem:[#allocation5 + $0x10] sm:$0xff]  ;;  %v84_v6 = vld [vmem:[#allocation5 + $0x18] sm:$0xff]  ;;  %s757_s28 = smov [#allocation10]  }
  0x4b   :  { %568 = vmatprep.subr.bf16.mxu1 %v754_v0  ;;  %506 = vmatprep.mubr.msk.f32.mxu1 %vm755_vm0, %v756_v1  ;;  %v545_v5 = vpack.c.bf16 %v82_v3, %v81_v2  ;;  %v548_v7 = vpack.c.bf16 %v84_v6, %v83_v4  ;;  %v85_v8 = vld [vmem:[#allocation5 + $0x20] sm:$0xff]  ;;  %v86_v9 = vld [vmem:[#allocation5 + $0x28] sm:$0xff]  ;;  %v176_v12 = vld [vmem:[#allocation7 + $0x10] sm:$0xff]  ;;  %s374_s29 = sshll.u32 %s757_s28, 4  ;;  %s375_s29 = int_to_ptr.vmem [resolvable:$true] %s374_s29 }
  0x4c   :  { %v174_v10 = vld [vmem:[#allocation7] sm:$0xff]  ;;  %v175_v11 = vld [vmem:[#allocation7 + $0x8] sm:$0xff]  ;;  %v177_v13 = vld [vmem:[#allocation7 + $0x18] sm:$0xff]  ;;  %v551_v14 = vpack.c.bf16 %v86_v9, %v85_v8  ;;  %p723_p5 = scmp.lt.s32.totalorder %s375_s29, %s375_s29 }
  0x4d   :  { %546 = vmatpush3.bf16.msra.mxu0 %v545_v5  ;;  %v569_v15 = vpack.c.bf16 %v175_v11, %v174_v10  ;;  %v87_v16 = vld [vmem:[#allocation5 + $0x30] sm:$0xff]  ;;  %v88_v17 = vld [vmem:[#allocation5 + $0x38] sm:$0xff]  ;;  %v572_v18 = vpack.c.bf16 %v177_v13, %v176_v12  ;;  %v178_v19 = vld [vmem:[#allocation7 + $0x20] sm:$0xff] }
  0x4e   :  { %547 = vmatprep.subr.bf16.mxu0 %v754_v0  ;;  %v179_v20 = vld [vmem:[#allocation7 + $0x28] sm:$0xff]  ;;  %v554_v21 = vpack.c.bf16 %v88_v17, %v87_v16  ;;  %v89_v22 = vld [vmem:[#allocation5 + $0x40] sm:$0xff]  ;;  %v180_v25 = vld [vmem:[#allocation7 + $0x30] sm:$0xff] }
  0x4f   :  { %570 = vmatpush3.bf16.msra.mxu1 %v569_v15  ;;  %v90_v23 = vld [vmem:[#allocation5 + $0x48] sm:$0xff]  ;;  %v575_v24 = vpack.c.bf16 %v179_v20, %v178_v19  ;;  %v181_v26 = vld [vmem:[#allocation7 + $0x38] sm:$0xff]  ;;  %v91_v28 = vld [vmem:[#allocation5 + $0x50] sm:$0xff] }
  0x50   :  { %571 = vmatprep.subr.bf16.mxu1 %v754_v0  ;;  %v557_v27 = vpack.c.bf16 %v90_v23, %v89_v22  ;;  %v92_v29 = vld [vmem:[#allocation5 + $0x58] sm:$0xff]  ;;  %v578_v30 = vpack.c.bf16 %v181_v26, %v180_v25  ;;  %v182_v31 = vld [vmem:[#allocation7 + $0x40] sm:$0xff]  ;;  %v183_v32 = vld [vmem:[#allocation7 + $0x48] sm:$0xff] }
  0x51   :  { %549 = vmatpush3.bf16.msra.mxu0 %v548_v7  ;;  %v560_v33 = vpack.c.bf16 %v92_v29, %v91_v28  ;;  %v93_v34 = vld [vmem:[#allocation5 + $0x60] sm:$0xff]  ;;  %v94_v35 = vld [vmem:[#allocation5 + $0x68] sm:$0xff]  ;;  %v581_v36 = vpack.c.bf16 %v183_v32, %v182_v31  ;;  %v184_v37 = vld [vmem:[#allocation7 + $0x50] sm:$0xff] }
  0x52   :  { %550 = vmatprep.subr.bf16.mxu0 %v754_v0  ;;  %v185_v38 = vld [vmem:[#allocation7 + $0x58] sm:$0xff]  ;;  %v563_v39 = vpack.c.bf16 %v94_v35, %v93_v34  ;;  %v95_v40 = vld [vmem:[#allocation5 + $0x70] sm:$0xff]  ;;  %v186_v43 = vld [vmem:[#allocation7 + $0x60] sm:$0xff] }
  0x53   :  { %573 = vmatpush3.bf16.msra.mxu1 %v572_v18  ;;  %v96_v41 = vld [vmem:[#allocation5 + $0x78] sm:$0xff]  ;;  %v584_v42 = vpack.c.bf16 %v185_v38, %v184_v37  ;;  %v187_v44 = vld [vmem:[#allocation7 + $0x68] sm:$0xff]  ;;  %v188_v48 = vld [vmem:[#allocation7 + $0x70] sm:$0xff] }
  0x54   :  { %574 = vmatprep.subr.bf16.mxu1 %v754_v0  ;;  %v566_v45 = vpack.c.bf16 %v96_v41, %v95_v40  ;;  %v587_v46 = vpack.c.bf16 %v187_v44, %v186_v43  ;;  %v80_v47 = vld [vmem:[#allocation2] sm:$0xff]  ;;  %v274_v55 = vld [vmem:[#allocation8] sm:$0xff]  ;;  %v275_v56 = vld [vmem:[#allocation8 + $0x8] sm:$0xff] }
  0x55   :  { %552 = vmatpush3.bf16.msra.mxu0 %v551_v14  ;;  %v189_v49 = vld [vmem:[#allocation7 + $0x78] sm:$0xff]  ;;  %v593_v57 = vpack.c.bf16 %v275_v56, %v274_v55  ;;  %v276_v58 = vld [vmem:[#allocation8 + $0x10] sm:$0xff]  ;;  %v278_v61 = vld [vmem:[#allocation8 + $0x20] sm:$0xff] }
  0x56   :  { %553 = vmatprep.subr.bf16.mxu0 %v754_v0  ;;  %v590_v50 = vpack.c.bf16 %v189_v49, %v188_v48  ;;  %v385_v51 = vld [vmem:[%s910_s4] ss:$0 sm:$0xff]  ;;  %v279_v62 = vld [vmem:[#allocation8 + $0x28] sm:$0xff]  ;;  %v282_v4 = vld [vmem:[#allocation8 + $0x40] sm:$0xff] }
  0x57   :  { %576 = vmatpush3.bf16.msra.mxu1 %v575_v24  ;;  %v277_v59 = vld [vmem:[#allocation8 + $0x18] sm:$0xff]  ;;  %v599_v63 = vpack.c.bf16 %v279_v62, %v278_v61  ;;  %v283_v5 = vld [vmem:[#allocation8 + $0x48] sm:$0xff]  ;;  %v284_v7 = vld [vmem:[#allocation8 + $0x50] sm:$0xff] }
  0x58   :  { %577 = vmatprep.subr.bf16.mxu1 %v754_v0  ;;  %v596_v60 = vpack.c.bf16 %v277_v59, %v276_v58  ;;  %v281_v2 = vld [vmem:[#allocation8 + $0x38] sm:$0xff]  ;;  %v605_v6 = vpack.c.bf16 %v283_v5, %v282_v4  ;;  %v286_v10 = vld [vmem:[#allocation8 + $0x60] sm:$0xff]  ;;  %v287_v11 = vld [vmem:[#allocation8 + $0x68] sm:$0xff] }
  0x59   :  { %555 = vmatpush3.bf16.msra.mxu0 %v554_v21  ;;  %v285_v8 = vld [vmem:[#allocation8 + $0x58] sm:$0xff]  ;;  %v611_v12 = vpack.c.bf16 %v287_v11, %v286_v10  ;;  %v288_v13 = vld [vmem:[#allocation8 + $0x70] sm:$0xff] }
  0x5a   :  { %556 = vmatprep.subr.bf16.mxu0 %v754_v0  ;;  %v608_v9 = vpack.c.bf16 %v285_v8, %v284_v7  ;;  %v289_v14 = vld [vmem:[#allocation8 + $0x78] sm:$0xff] }
  0x5b   :  { %579 = vmatpush3.bf16.msra.mxu1 %v578_v30  ;;  %v614_v15 = vpack.c.bf16 %v289_v14, %v288_v13  ;;  %v386_v16 = vld [vmem:[%s911_s5] ss:$0 sm:$0xff]  ;;  %s718_s5 = scalar_lea.vmem %s375_s29, 128 }
  0x5c   :  { %580 = vmatprep.subr.bf16.mxu1 %v754_v0  ;;  %p719_p4 = scmp.ne.s32.totalorder %s375_s29, %s718_s5  ;;  %p724_p6 = scmp.lt.s32.totalorder %s718_s5, %s718_s5 }
  0x5d   :  { %558 = vmatpush3.bf16.msra.mxu0 %v557_v27 }
  0x5e   :  { %559 = vmatprep.subr.bf16.mxu0 %v754_v0  ;;  %p725_p7 = por %p724_p6, %p723_p5 }
  0x5f   :  { %582 = vmatpush3.bf16.msra.mxu1 %v581_v36 }
  0x60   :  { %583 = vmatprep.subr.bf16.mxu1 %v754_v0  ;;  %p726_p8 = pnand %p725_p7, %p719_p4 }
  0x61   :  { %561 = vmatpush3.bf16.msra.mxu0 %v560_v33 }
  0x62   :  { %562 = vmatprep.subr.bf16.mxu0 %v754_v0 }
  0x63   :  { %585 = vmatpush3.bf16.msra.mxu1 %v584_v42 }
  0x64   :  { %586 = vmatprep.subr.bf16.mxu1 %v754_v0 }
  0x65   :  { %564 = vmatpush3.bf16.msra.mxu0 %v563_v39 }
  0x66   :  { %565 = vmatprep.subr.bf16.mxu0 %v754_v0 }
  0x67   :  { %588 = vmatpush3.bf16.msra.mxu1 %v587_v46 }
  0x68   :  { %589 = vmatprep.subr.bf16.mxu1 %v754_v0 }
  0x69   :  { %567 = vmatpush3.bf16.msra.mxu0 %v566_v45 }
  0x6a   :  { %592 = vmatprep.subr.bf16.mxu0 %v754_v0 }
  0x6b   :  { %591 = vmatpush3.bf16.msra.mxu1 %v590_v50 }
  0x6c   :  { %472 = vmatmul.mubr.f32.vlgmr.msra.gmra.mrb[0].mxu0 %v80_v47 }
  0x6d   :  { %541 = vmatprep.mubr.msk.f32.mxu0 %vm755_vm0, %v756_v1  ;;  %594 = vmatpush3.bf16.msra.mxu0 %v593_v57  ;;  %v280_v1 = vld [vmem:[#allocation8 + $0x30] sm:$0xff] }
  0x6e   :  { %595 = vmatprep.subr.bf16.mxu0 %v754_v0  ;;  %v602_v3 = vpack.c.bf16 %v281_v2, %v280_v1 }
  0x71   :  { %597 = vmatpush3.bf16.msra.mxu0 %v596_v60 }
  0x72   :  { %598 = vmatprep.subr.bf16.mxu0 %v754_v0 }
  0x75   :  { %600 = vmatpush3.bf16.msra.mxu0 %v599_v63 }
  0x76   :  { %601 = vmatprep.subr.bf16.mxu0 %v754_v0 }
  0x79   :  { %603 = vmatpush3.bf16.msra.mxu0 %v602_v3 }
  0x7a   :  { %604 = vmatprep.subr.bf16.mxu0 %v754_v0 }
  0x7d   :  { %606 = vmatpush3.bf16.msra.mxu0 %v605_v6 }
  0x7e   :  { %607 = vmatprep.subr.bf16.mxu0 %v754_v0 }
  0x81   :  { %609 = vmatpush3.bf16.msra.mxu0 %v608_v9 }
  0x82   :  { %610 = vmatprep.subr.bf16.mxu0 %v754_v0 }
  0x85   :  { %612 = vmatpush3.bf16.msra.mxu0 %v611_v12 }
  0x86   :  { %613 = vmatprep.subr.bf16.mxu0 %v754_v0  ;;  %v387_v0 = vld [vmem:[%s912_s6] ss:$0 sm:$0xff] }
  0x89   :  { %615 = vmatpush3.bf16.msra.mxu0 %v614_v15 }
 0x13f   :  { %v170_v52 = vpop.f32.mrb[0].mxu0 }
 0x140   :  { %v171_v53 = vadd.f32 %v385_v51, %v170_v52  ;;  %v473_v54 = vpop.f32.mrb[1].mxu0 }
 0x142   :  { %507 = vmatmul.mubr.f32.vlgmr.msra.gmra.mrb[0].mxu1 %v171_v53 }
 0x215   :  { %v263_v17 = vpop.f32.mrb[0].mxu1 }
 0x216   :  { %v264_v18 = vadd.f32 %v386_v16, %v263_v17  ;;  %v508_v19 = vpop.f32.mrb[1].mxu1 }
 0x218   :  { %v267_v20 = vsub.f32 0.0, %v264_v18 }
 0x21a   :  { %v268_v21 = vmul.f32 1.442695, %v267_v20 }
 0x21c   :  { %626 = vpow2.f32 %v268_v21 }
 0x226   :  { %v627_v22 = vpop.eup %626 }
 0x227   :  { %v270_v23 = vadd.f32 1.0, %v627_v22 }
 0x229   :  { %628 = vrcp.f32 %v270_v23 }
 0x233   :  { %v629_v24 = vpop.eup %628 }
 0x234   :  { %v273_v25 = vmul.f32 %v629_v24, %v264_v18 }
 0x236   :  { %542 = vmatmul.mubr.f32.vlgmr.msra.gmra.mrb[2].mxu0 %v273_v25 }
 0x309   :  { %v363_v26 = vpop.f32.mrb[2].mxu0 }
 0x30a   :  { %v364_v27 = vadd.f32 %v387_v0, %v363_v26  ;;  %v543_v28 = vpop.f32.mrb[3].mxu0 }
 0x30c   :  { %367 = vst [vmem:[#allocation10] sm:$0xff] %v364_v27 }
 0x30d   :  { %729 = shalt.err (!%p726_p8)
}
 0x30e   :  { %s730_s9 = scalar_lea.hbm %s913_s7, 128 }
 0x30f   :  { %p731_p9 = scmp.ne.s32.totalorder %s913_s7, %s730_s9  ;;  %p734_p10 = scmp.lt.u32.totalorder %s730_s9, %s913_s7 }
 0x311   :  { %p736_p11 = pnand %p734_p10, %p731_p9 }
 0x313   :  { %739 = shalt.err (!%p736_p11)
}
 0x314   :  { %377 = dma.vmem_to_hbm [thread:$0]  %s375_s29, 128, %s913_s7, [#allocation4]  }
 0x315   :  { %746 = dma.done.wait [#allocation4], 128  }
 0x316   :  { %747 = vsyncadd [#allocation4], 4294967168 }
 0x317   :  { %381 = vsyncpa [#allocation3], 1 }
 0x318   :  { %382 = vsyncpa [#allocation6], 1 }
 0x319   :  { %383 = vsyncpa [#allocation9], 1 }
 0x31a   :  { %384 = vsyncpa [#allocation4], 1 }

</bundles_post_ra>
